<compile_context>
chip_gen: v7x
topology: tpu7x:2x2x1
jax: 0.10.0
libtpu: 0.0.40
codegen_flags: <defaults>
</compile_context>

<pallas_src>
import functools
import math

import jax
import jax.numpy as jnp
from jax import lax
from jax.experimental import pallas as pl
from jax.experimental.pallas import tpu as pltpu


# ---------------------------------------------------------------------------
# Fused kernel: one (Bt, S, D) batch tile per grid step.
#   qkv = x @ Wqkv                     (bf16 in, f32 acc; scale pre-folded into Q cols)
#   per head: softmax(Q K^T + causal_bias) @ V   -> VMEM slab
#   y = slab @ Wo + x ; LayerNorm(y) * gamma + beta
# ---------------------------------------------------------------------------
def mha_fused_kernel(x_ref, wqkv_ref, wo_ref, bias_ref, g_ref, b_ref,
                     o_ref, a_slab, *, num_heads):
    Bt, S, D = x_ref.shape
    hdk = wqkv_ref.shape[1] // 3                  # num_heads * 64
    d_k = hdk // num_heads

    x = x_ref[...]                                # (Bt, S, D) f32
    x2 = x.reshape(Bt * S, D)                     # stacked rows (residual + matmul LHS)

    # --- fused Q/K/V projection: one MXU matmul over all Bt*S rows ---
    qkv = jnp.dot(x2.astype(jnp.bfloat16), wqkv_ref[...],
                  preferred_element_type=jnp.float32)        # (Bt*S, 3*hdk) f32
    qkv = qkv.reshape(Bt, S, 3 * hdk)

    bias = bias_ref[...]                          # (S, S) f32, 0 / -1e7 causal bias

    # --- attention over all heads; contexts written straight into the VMEM slab ---
    for h in range(num_heads):                    # static unroll; static lane slices
        q0 = h * d_k
        k0 = hdk + h * d_k
        v0 = 2 * hdk + h * d_k
        qh = qkv[:, :, q0:q0 + d_k].astype(jnp.bfloat16)     # (Bt, S, d_k), pre-scaled
        kh = qkv[:, :, k0:k0 + d_k].astype(jnp.bfloat16)
        vh = qkv[:, :, v0:v0 + d_k].astype(jnp.bfloat16)

        # batched Q @ K^T over the in-tile batch dim (contract last dims)
        s = lax.dot_general(qh, kh, (((2,), (2,)), ((0,), (0,))),
                            preferred_element_type=jnp.float32)      # (Bt, S, S)
        s = s + bias                                                 # causal mask

        # softmax statistics in f32; normalization via EUP approx reciprocal
        m = jnp.max(s, axis=-1, keepdims=True)
        e = jnp.exp(s - m)
        denom = jnp.sum(e, axis=-1, keepdims=True)
        p = (e * pl.reciprocal(denom, approx=True)).astype(jnp.bfloat16)

        ctx = lax.dot_general(p, vh, (((2,), (1,)), ((0,), (0,))),
                              preferred_element_type=jnp.float32)    # (Bt, S, d_k)
        a_slab[:, :, q0:q0 + d_k] = ctx.astype(jnp.bfloat16)

    # --- output projection + residual + LayerNorm (two-pass variance) ---
    a = a_slab[...].reshape(Bt * S, hdk)                             # (Bt*S, hdk) bf16
    y = jnp.dot(a, wo_ref[...], preferred_element_type=jnp.float32) + x2   # (Bt*S, D)
    mean = jnp.mean(y, axis=-1, keepdims=True)
    yc = y - mean
    var = jnp.mean(yc * yc, axis=-1, keepdims=True)
    inv = lax.rsqrt(var + jnp.float32(1e-5))
    out = yc * inv * g_ref[...] + b_ref[...]                         # (Bt*S, D)
    o_ref[...] = out.reshape(Bt, S, D)


# ---------------------------------------------------------------------------
# One-time parameter preparation (hoisted out of the per-call wrapper).
# ---------------------------------------------------------------------------
def prepare_mha_params(wq, wk, wv, wo, seq_len, num_heads):
    """Fuse Wq/Wk/Wv (Q pre-scaled by 1/sqrt(d_k)), cast to bf16, build causal bias."""
    hdk = wq.shape[1]
    d_k = hdk // num_heads
    wq_scaled = wq * jnp.float32(1.0 / math.sqrt(d_k))
    wqkv = jnp.concatenate([wq_scaled, wk, wv], axis=1).astype(jnp.bfloat16)  # (D, 3*HDK)
    wo_b = wo.astype(jnp.bfloat16)                                            # (HDK, D)
    rows = lax.broadcasted_iota(jnp.int32, (seq_len, seq_len), 0)
    cols = lax.broadcasted_iota(jnp.int32, (seq_len, seq_len), 1)
    bias = jnp.where(cols > rows, jnp.float32(-10000000.0), jnp.float32(0.0))  # (S, S)
    return wqkv, wo_b, bias


def _choose_block_batch(B, S, target_rows=256):
    """Batch-tile size: ~target_rows rows per step, >=2 grid steps when B allows."""
    bt = max(1, min(B, max(1, target_rows // max(S, 1))))
    if bt >= B and B >= 2:        # keep both v7x TensorCores busy when possible
        bt = max(1, B // 2)
    while bt > 1 and B % bt != 0:
        bt -= 1
    return bt


# ---------------------------------------------------------------------------
# Wrapper (takes pre-fused bf16 weights + precomputed causal bias)
# ---------------------------------------------------------------------------
def multi_head_attention(x, wqkv, wo_b, bias, gamma, beta, num_heads):
    """x: (B, S, D) f32.  wqkv: (D, 3*HDK) bf16 (Q pre-scaled).  wo_b: (HDK, D) bf16."""
    B, S, D = x.shape
    HDK = wqkv.shape[1] // 3
    Bt = _choose_block_batch(B, S)

    kernel = functools.partial(mha_fused_kernel, num_heads=num_heads)

    return pl.pallas_call(
        kernel,
        out_shape=jax.ShapeDtypeStruct((B, S, D), jnp.float32),
        grid=(B // Bt,),
        in_specs=[
            pl.BlockSpec((Bt, S, D), lambda i: (i, 0, 0)),       # x (also residual)
            pl.BlockSpec((D, 3 * HDK), lambda i: (0, 0)),        # fused Wqkv (bf16)
            pl.BlockSpec((HDK, D), lambda i: (0, 0)),            # Wo (bf16)
            pl.BlockSpec((S, S), lambda i: (0, 0)),              # causal bias (f32)
            pl.BlockSpec((1, D), lambda i: (0, 0)),              # gamma
            pl.BlockSpec((1, D), lambda i: (0, 0)),              # beta
        ],
        out_specs=pl.BlockSpec((Bt, S, D), lambda i: (i, 0, 0)),
        scratch_shapes=[pltpu.VMEM((Bt, S, HDK), jnp.bfloat16)],  # per-head context slab
        compiler_params=pltpu.CompilerParams(dimension_semantics=("parallel",)),
    )(x, wqkv, wo_b, bias, gamma, beta)


# ---------------------------------------------------------------------------
# Pure-JAX f32 reference (sanity check)
# ---------------------------------------------------------------------------
def reference(x, wq, wk, wv, wo, gamma, beta, num_heads):
    B, S, D = x.shape
    HDK = wq.shape[1]
    d_k = HDK // num_heads
    q = (x @ wq).reshape(B, S, num_heads, d_k).transpose(0, 2, 1, 3)
    k = (x @ wk).reshape(B, S, num_heads, d_k).transpose(0, 2, 1, 3)
    v = (x @ wv).reshape(B, S, num_heads, d_k).transpose(0, 2, 1, 3)
    score = jnp.einsum("bhqd,bhkd->bhqk", q, k) / math.sqrt(d_k)
    mask = jnp.triu(jnp.ones((S, S), dtype=bool), k=1)
    score = jnp.where(mask, -10000000.0, score)
    p = jax.nn.softmax(score, axis=-1)
    a = jnp.einsum("bhqk,bhkd->bhqd", p, v).transpose(0, 2, 1, 3).reshape(B, S, HDK)
    y = a @ wo + x
    mean = jnp.mean(y, -1, keepdims=True)
    var = jnp.mean((y - mean) ** 2, -1, keepdims=True)
    return (y - mean) / jnp.sqrt(var + 1e-5) * gamma[0] + beta[0]


if __name__ == "__main__":
    # Small shapes consistent with the module (d_q = d_k = d_v = 64 hard-coded).
    B, S, D, H = 2, 8, 32, 2
    HDK = 64 * H

    key = jax.random.PRNGKey(0)
    kx, kq, kk, kv, ko = jax.random.split(key, 5)

    x = jax.random.normal(kx, (B, S, D), dtype=jnp.float32)
    scale = 1.0 / math.sqrt(D)
    wq = jax.random.uniform(kq, (D, HDK), jnp.float32, -scale, scale)
    wk = jax.random.uniform(kk, (D, HDK), jnp.float32, -scale, scale)
    wv = jax.random.uniform(kv, (D, HDK), jnp.float32, -scale, scale)
    wo = jax.random.uniform(ko, (HDK, D), jnp.float32,
                            -1.0 / math.sqrt(HDK), 1.0 / math.sqrt(HDK))
    gamma = jnp.ones((1, D), jnp.float32)   # LayerNorm weight (torch default)
    beta = jnp.zeros((1, D), jnp.float32)   # LayerNorm bias (torch default)

    # One-time weight fusion / bf16 cast / scale fold / mask build (out of hot path).
    wqkv, wo_b, bias = prepare_mha_params(wq, wk, wv, wo, S, H)
    wqkv, wo_b, bias = jax.block_until_ready((wqkv, wo_b, bias))

    out = multi_head_attention(x, wqkv, wo_b, bias, gamma, beta, H)
    out = jax.block_until_ready(out)

    ref = reference(x, wq, wk, wv, wo, gamma, beta, H)
    assert out.shape == (B, S, D)
    # bf16 matmul operands (f32 accumulate) + approx reciprocal -> looser tolerance.
    assert jnp.allclose(out, ref, atol=5e-2, rtol=5e-2), "mismatch vs reference"

    print("KERNEL_OK")
</pallas_src>

<mosaic_0001>
module attributes {stable_mosaic.version = 11 : i64} {
  func.func @mha_fused_kernel(%arg0: i32, %arg1: memref<1x8x32xf32, #tpu.memory_space<vmem>>, %arg2: memref<32x384xbf16, #tpu.memory_space<vmem>>, %arg3: memref<128x32xbf16, #tpu.memory_space<vmem>>, %arg4: memref<8x8xf32, #tpu.memory_space<vmem>>, %arg5: memref<1x32xf32, #tpu.memory_space<vmem>>, %arg6: memref<1x32xf32, #tpu.memory_space<vmem>>, %arg7: memref<1x8x32xf32, #tpu.memory_space<vmem>>, %arg8: memref<1x8x128xbf16, #tpu.memory_space<vmem>>) attributes {dimension_semantics = [#tpu.dimension_semantics<parallel>], iteration_bounds = array<i64: 2>, scalar_prefetch = 0 : i64, scratch_operands = 1 : i64, tpu.core_type = #tpu.core_type<tc>, window_params = [{transform_indices = @transform_0, window_bounds = array<i64: 1, 8, 32>}, {pipeline_mode = #tpu.pipeline_mode<synchronous>, transform_indices = @transform_1, window_bounds = array<i64: 32, 384>}, {pipeline_mode = #tpu.pipeline_mode<synchronous>, transform_indices = @transform_2, window_bounds = array<i64: 128, 32>}, {pipeline_mode = #tpu.pipeline_mode<synchronous>, transform_indices = @transform_3, window_bounds = array<i64: 8, 8>}, {pipeline_mode = #tpu.pipeline_mode<synchronous>, transform_indices = @transform_4, window_bounds = array<i64: 1, 32>}, {pipeline_mode = #tpu.pipeline_mode<synchronous>, transform_indices = @transform_5, window_bounds = array<i64: 1, 32>}, {transform_indices = @transform_6, window_bounds = array<i64: 1, 8, 32>}]} {
    %c0 = arith.constant 0 : index
    %c0_0 = arith.constant 0 : index
    %c0_1 = arith.constant 0 : index
    %0 = vector.load %arg1[%c0, %c0_0, %c0_1] : memref<1x8x32xf32, #tpu.memory_space<vmem>>, vector<1x8x32xf32>
    %1 = vector.shape_cast %0 : vector<1x8x32xf32> to vector<8x32xf32>
    %2 = arith.truncf %1 : vector<8x32xf32> to vector<8x32xbf16>
    %c0_2 = arith.constant 0 : index
    %c0_3 = arith.constant 0 : index
    %3 = vector.load %arg2[%c0_2, %c0_3] : memref<32x384xbf16, #tpu.memory_space<vmem>>, vector<32x384xbf16>
    %cst = arith.constant dense<0.000000e+00> : vector<8x384xf32>
    %4 = tpu.matmul %2, %3, %cst {dimension_numbers = #tpu.dot_dimension_numbers<[1], [0], [0], [1], [0, 0, 1, 1], [], []>} : vector<8x32xbf16>, vector<32x384xbf16>, vector<8x384xf32> -> vector<8x384xf32>
    %5 = vector.shape_cast %4 : vector<8x384xf32> to vector<1x8x384xf32>
    %c0_4 = arith.constant 0 : index
    %c0_5 = arith.constant 0 : index
    %6 = vector.load %arg4[%c0_4, %c0_5] : memref<8x8xf32, #tpu.memory_space<vmem>>, vector<8x8xf32>
    %7 = vector.extract_strided_slice %5 {offsets = [0, 0, 0], sizes = [1, 8, 64], strides = [1, 1, 1]} : vector<1x8x384xf32> to vector<1x8x64xf32>
    %8 = arith.truncf %7 : vector<1x8x64xf32> to vector<1x8x64xbf16>
    %9 = vector.extract_strided_slice %5 {offsets = [0, 0, 128], sizes = [1, 8, 64], strides = [1, 1, 1]} : vector<1x8x384xf32> to vector<1x8x64xf32>
    %10 = arith.truncf %9 : vector<1x8x64xf32> to vector<1x8x64xbf16>
    %11 = vector.extract_strided_slice %5 {offsets = [0, 0, 256], sizes = [1, 8, 64], strides = [1, 1, 1]} : vector<1x8x384xf32> to vector<1x8x64xf32>
    %12 = arith.truncf %11 : vector<1x8x64xf32> to vector<1x8x64xbf16>
    %cst_6 = arith.constant dense<0.000000e+00> : vector<1x8x8xf32>
    %13 = tpu.matmul %8, %10, %cst_6 {dimension_numbers = #tpu.dot_dimension_numbers<[2], [2], [1], [1], [0, 0, 0, 1, 1, 1], [0], [0]>} : vector<1x8x64xbf16>, vector<1x8x64xbf16>, vector<1x8x8xf32> -> vector<1x8x8xf32>
    %14 = vector.shape_cast %6 : vector<8x8xf32> to vector<1x8x8xf32>
    %15 = arith.addf %13, %14 : vector<1x8x8xf32>
    %cst_7 = arith.constant dense<0xFF800000> : vector<1x8xf32>
    %16 = vector.multi_reduction <maximumf>, %15, %cst_7 [2] : vector<1x8x8xf32> to vector<1x8xf32>
    %17 = vector.shape_cast %16 : vector<1x8xf32> to vector<1x8x1xf32>
    %18 = vector.broadcast %17 : vector<1x8x1xf32> to vector<1x8x8xf32>
    %19 = arith.subf %15, %18 : vector<1x8x8xf32>
    %20 = math.exp %19 : vector<1x8x8xf32>
    %cst_8 = arith.constant dense<0.000000e+00> : vector<1x8xf32>
    %21 = vector.multi_reduction <add>, %20, %cst_8 [2] : vector<1x8x8xf32> to vector<1x8xf32>
    %22 = vector.shape_cast %21 : vector<1x8xf32> to vector<1x8x1xf32>
    %23 = tpu.reciprocal %22 {approx = true} : vector<1x8x1xf32> -> vector<1x8x1xf32>
    %24 = vector.broadcast %23 : vector<1x8x1xf32> to vector<1x8x8xf32>
    %25 = arith.mulf %20, %24 : vector<1x8x8xf32>
    %26 = arith.truncf %25 : vector<1x8x8xf32> to vector<1x8x8xbf16>
    %cst_9 = arith.constant dense<0.000000e+00> : vector<1x8x64xf32>
    %27 = tpu.matmul %26, %12, %cst_9 {dimension_numbers = #tpu.dot_dimension_numbers<[2], [1], [1], [2], [0, 0, 0, 1, 1, 2], [0], [0]>} : vector<1x8x8xbf16>, vector<1x8x64xbf16>, vector<1x8x64xf32> -> vector<1x8x64xf32>
    %28 = arith.truncf %27 : vector<1x8x64xf32> to vector<1x8x64xbf16>
    %c0_10 = arith.constant 0 : index
    %c0_11 = arith.constant 0 : index
    %c0_12 = arith.constant 0 : index
    %29 = vector.load %arg8[%c0_10, %c0_11, %c0_12] : memref<1x8x128xbf16, #tpu.memory_space<vmem>>, vector<1x8x64xbf16>
    tpu.vector_store %arg8[%c0_10, %c0_11, %c0_12], %28 {strides = array<i32>} : memref<1x8x128xbf16, #tpu.memory_space<vmem>>, vector<1x8x64xbf16>,
    %30 = vector.extract_strided_slice %5 {offsets = [0, 0, 64], sizes = [1, 8, 64], strides = [1, 1, 1]} : vector<1x8x384xf32> to vector<1x8x64xf32>
    %31 = arith.truncf %30 : vector<1x8x64xf32> to vector<1x8x64xbf16>
    %32 = vector.extract_strided_slice %5 {offsets = [0, 0, 192], sizes = [1, 8, 64], strides = [1, 1, 1]} : vector<1x8x384xf32> to vector<1x8x64xf32>
    %33 = arith.truncf %32 : vector<1x8x64xf32> to vector<1x8x64xbf16>
    %34 = vector.extract_strided_slice %5 {offsets = [0, 0, 320], sizes = [1, 8, 64], strides = [1, 1, 1]} : vector<1x8x384xf32> to vector<1x8x64xf32>
    %35 = arith.truncf %34 : vector<1x8x64xf32> to vector<1x8x64xbf16>
    %cst_13 = arith.constant dense<0.000000e+00> : vector<1x8x8xf32>
    %36 = tpu.matmul %31, %33, %cst_13 {dimension_numbers = #tpu.dot_dimension_numbers<[2], [2], [1], [1], [0, 0, 0, 1, 1, 1], [0], [0]>} : vector<1x8x64xbf16>, vector<1x8x64xbf16>, vector<1x8x8xf32> -> vector<1x8x8xf32>
    %37 = vector.shape_cast %6 : vector<8x8xf32> to vector<1x8x8xf32>
    %38 = arith.addf %36, %37 : vector<1x8x8xf32>
    %cst_14 = arith.constant dense<0xFF800000> : vector<1x8xf32>
    %39 = vector.multi_reduction <maximumf>, %38, %cst_14 [2] : vector<1x8x8xf32> to vector<1x8xf32>
    %40 = vector.shape_cast %39 : vector<1x8xf32> to vector<1x8x1xf32>
    %41 = vector.broadcast %40 : vector<1x8x1xf32> to vector<1x8x8xf32>
    %42 = arith.subf %38, %41 : vector<1x8x8xf32>
    %43 = math.exp %42 : vector<1x8x8xf32>
    %cst_15 = arith.constant dense<0.000000e+00> : vector<1x8xf32>
    %44 = vector.multi_reduction <add>, %43, %cst_15 [2] : vector<1x8x8xf32> to vector<1x8xf32>
    %45 = vector.shape_cast %44 : vector<1x8xf32> to vector<1x8x1xf32>
    %46 = tpu.reciprocal %45 {approx = true} : vector<1x8x1xf32> -> vector<1x8x1xf32>
    %47 = vector.broadcast %46 : vector<1x8x1xf32> to vector<1x8x8xf32>
    %48 = arith.mulf %43, %47 : vector<1x8x8xf32>
    %49 = arith.truncf %48 : vector<1x8x8xf32> to vector<1x8x8xbf16>
    %cst_16 = arith.constant dense<0.000000e+00> : vector<1x8x64xf32>
    %50 = tpu.matmul %49, %35, %cst_16 {dimension_numbers = #tpu.dot_dimension_numbers<[2], [1], [1], [2], [0, 0, 0, 1, 1, 2], [0], [0]>} : vector<1x8x8xbf16>, vector<1x8x64xbf16>, vector<1x8x64xf32> -> vector<1x8x64xf32>
    %51 = arith.truncf %50 : vector<1x8x64xf32> to vector<1x8x64xbf16>
    %c0_17 = arith.constant 0 : index
    %c0_18 = arith.constant 0 : index
    %c64 = arith.constant 64 : index
    %52 = vector.load %arg8[%c0_17, %c0_18, %c64] : memref<1x8x128xbf16, #tpu.memory_space<vmem>>, vector<1x8x64xbf16>
    tpu.vector_store %arg8[%c0_17, %c0_18, %c64], %51 {strides = array<i32>} : memref<1x8x128xbf16, #tpu.memory_space<vmem>>, vector<1x8x64xbf16>,
    %c0_19 = arith.constant 0 : index
    %c0_20 = arith.constant 0 : index
    %c0_21 = arith.constant 0 : index
    %53 = vector.load %arg8[%c0_19, %c0_20, %c0_21] : memref<1x8x128xbf16, #tpu.memory_space<vmem>>, vector<1x8x128xbf16>
    %54 = vector.shape_cast %53 : vector<1x8x128xbf16> to vector<8x128xbf16>
    %c0_22 = arith.constant 0 : index
    %c0_23 = arith.constant 0 : index
    %55 = vector.load %arg3[%c0_22, %c0_23] : memref<128x32xbf16, #tpu.memory_space<vmem>>, vector<128x32xbf16>
    %cst_24 = arith.constant dense<0.000000e+00> : vector<8x32xf32>
    %56 = tpu.matmul %54, %55, %cst_24 {dimension_numbers = #tpu.dot_dimension_numbers<[1], [0], [0], [1], [0, 0, 1, 1], [], []>} : vector<8x128xbf16>, vector<128x32xbf16>, vector<8x32xf32> -> vector<8x32xf32>
    %57 = arith.addf %56, %1 : vector<8x32xf32>
    %cst_25 = arith.constant dense<0.000000e+00> : vector<8xf32>
    %58 = vector.multi_reduction <add>, %57, %cst_25 [1] : vector<8x32xf32> to vector<8xf32>
    %59 = vector.shape_cast %58 : vector<8xf32> to vector<8x1xf32>
    %cst_26 = arith.constant 3.200000e+01 : f32
    %60 = vector.broadcast %cst_26 : f32 to vector<8x1xf32>
    %61 = arith.divf %59, %60 : vector<8x1xf32>
    %62 = vector.broadcast %61 : vector<8x1xf32> to vector<8x32xf32>
    %63 = arith.subf %57, %62 : vector<8x32xf32>
    %64 = arith.mulf %63, %63 : vector<8x32xf32>
    %cst_27 = arith.constant dense<0.000000e+00> : vector<8xf32>
    %65 = vector.multi_reduction <add>, %64, %cst_27 [1] : vector<8x32xf32> to vector<8xf32>
    %66 = vector.shape_cast %65 : vector<8xf32> to vector<8x1xf32>
    %cst_28 = arith.constant 3.200000e+01 : f32
    %67 = vector.broadcast %cst_28 : f32 to vector<8x1xf32>
    %68 = arith.divf %66, %67 : vector<8x1xf32>
    %cst_29 = arith.constant 9.99999974E-6 : f32
    %69 = vector.broadcast %cst_29 : f32 to vector<8x1xf32>
    %70 = arith.addf %68, %69 : vector<8x1xf32>
    %71 = math.rsqrt %70 : vector<8x1xf32>
    %72 = vector.broadcast %71 : vector<8x1xf32> to vector<8x32xf32>
    %73 = arith.mulf %63, %72 : vector<8x32xf32>
    %c0_30 = arith.constant 0 : index
    %c0_31 = arith.constant 0 : index
    %74 = vector.load %arg5[%c0_30, %c0_31] : memref<1x32xf32, #tpu.memory_space<vmem>>, vector<1x32xf32>
    %75 = vector.broadcast %74 : vector<1x32xf32> to vector<8x32xf32>
    %76 = arith.mulf %73, %75 : vector<8x32xf32>
    %c0_32 = arith.constant 0 : index
    %c0_33 = arith.constant 0 : index
    %77 = vector.load %arg6[%c0_32, %c0_33] : memref<1x32xf32, #tpu.memory_space<vmem>>, vector<1x32xf32>
    %78 = vector.broadcast %77 : vector<1x32xf32> to vector<8x32xf32>
    %79 = arith.addf %76, %78 : vector<8x32xf32>
    %80 = vector.shape_cast %79 : vector<8x32xf32> to vector<1x8x32xf32>
    %c0_34 = arith.constant 0 : index
    %c0_35 = arith.constant 0 : index
    %c0_36 = arith.constant 0 : index
    %81 = vector.load %arg7[%c0_34, %c0_35, %c0_36] : memref<1x8x32xf32, #tpu.memory_space<vmem>>, vector<1x8x32xf32>
    tpu.vector_store %arg7[%c0_34, %c0_35, %c0_36], %80 {strides = array<i32>} : memref<1x8x32xf32, #tpu.memory_space<vmem>>, vector<1x8x32xf32>,
    return
  }
  func.func @transform_0(%arg0: i32) -> (i32, i32, i32) {
    %c0_i32 = arith.constant 0 : i32
    %c0_i32_0 = arith.constant 0 : i32
    %c0_i32_1 = arith.constant 0 : i32
    return %arg0, %c0_i32, %c0_i32_0 : i32, i32, i32
  }
  func.func @transform_1(%arg0: i32) -> (i32, i32) {
    %c0_i32 = arith.constant 0 : i32
    %c0_i32_0 = arith.constant 0 : i32
    %c0_i32_1 = arith.constant 0 : i32
    return %c0_i32, %c0_i32_0 : i32, i32
  }
  func.func @transform_2(%arg0: i32) -> (i32, i32) {
    %c0_i32 = arith.constant 0 : i32
    %c0_i32_0 = arith.constant 0 : i32
    %c0_i32_1 = arith.constant 0 : i32
    return %c0_i32, %c0_i32_0 : i32, i32
  }
  func.func @transform_3(%arg0: i32) -> (i32, i32) {
    %c0_i32 = arith.constant 0 : i32
    %c0_i32_0 = arith.constant 0 : i32
    %c0_i32_1 = arith.constant 0 : i32
    return %c0_i32, %c0_i32_0 : i32, i32
  }
  func.func @transform_4(%arg0: i32) -> (i32, i32) {
    %c0_i32 = arith.constant 0 : i32
    %c0_i32_0 = arith.constant 0 : i32
    %c0_i32_1 = arith.constant 0 : i32
    return %c0_i32, %c0_i32_0 : i32, i32
  }
  func.func @transform_5(%arg0: i32) -> (i32, i32) {
    %c0_i32 = arith.constant 0 : i32
    %c0_i32_0 = arith.constant 0 : i32
    %c0_i32_1 = arith.constant 0 : i32
    return %c0_i32, %c0_i32_0 : i32, i32
  }
  func.func @transform_6(%arg0: i32) -> (i32, i32, i32) {
    %c0_i32 = arith.constant 0 : i32
    %c0_i32_0 = arith.constant 0 : i32
    %c0_i32_1 = arith.constant 0 : i32
    return %arg0, %c0_i32, %c0_i32_0 : i32, i32, i32
  }
}

</mosaic_0001>

<bundles_post_ra>
// kernel: tpu_custom_call.1
= control target key start
LH: loop header
LB: loop body
LE: loop exit
PB: predicated region body
PF: predicated region fallthrough
CT: control target
= control target key end

     0   :  { %11 = vsyncpa [#allocation4], 0  ;;  %s1302_s0 = inlined_call_operand.vmem [shape: f32[2,8,32], index: 0, kind: input, shape index: {}]   ;;  %s1303_s1 = inlined_call_operand.vmem [shape: bf16[32,384], index: 1, kind: input, shape index: {}]   ;;  %s1304_s2 = inlined_call_operand.vmem [shape: bf16[128,32], index: 2, kind: input, shape index: {}]   ;;  %s1305_s3 = inlined_call_operand.vmem [shape: f32[8,8], index: 3, kind: input, shape index: {}]   ;;  %s1306_s4 = inlined_call_operand.vmem [shape: f32[1,32], index: 4, kind: input, shape index: {}]   ;;  %s1307_s5 = inlined_call_operand.vmem [shape: f32[1,32], index: 5, kind: input, shape index: {}]   ;;  %s1308_s6 = inlined_call_operand.hbm [shape: f32[2,8,32], index: 6, kind: output, shape index: {}]  }
   0x1   :  { %13 = vsyncpa [#allocation4 + $0x1], 0  ;;  %s1099_s21 = smov 0   ;;  %s1101_s22 = smov 0  }
   0x2   :  { %s1103_s23 = smov 0   ;;  %s1105_s24 = smov 0  }
   0x3 LB: > { %s1120_s25 = sadd.s32 4294967295, %s1057_s24   ;;  %s820_s26 = sadd.s32 4294967294, %s1057_s24   ;;  %s1057_s24 = sphi %s1105_s24, %s1314_s24   ;;  %s1053_s23 = sphi %s1103_s23, %s1313_s23   ;;  %s1049_s22 = sphi %s1101_s22, %s1312_s22   ;;  %s1045_s21 = sphi %s1099_s21, %s1311_s21  }
   0x4   : > { %s1124_s27 = sadd.s32 1, %s1057_s24   ;;  %s157_s28 = sadd.s32 1, %s1053_s23 }
   0x5   : > { %s154_s29 = ssub.s32 %s1057_s24, %s1124_s27  ;;  %p167_p0 = scmp.ne.s32.totalorder %s1053_s23, %s1049_s22 }
   0x6   : > { %p155_p1 = scmp.eq.s32.totalorder %s154_s29, 0  ;;  %p168_p2 = scmp.eq.s32.totalorder %s1120_s25, 1 }
   0x7   : > { %p173_p3 = scmp.ne.s32.totalorder %s1049_s22, %s1045_s21  ;;  %p174_p4 = scmp.eq.s32.totalorder %s820_s26, 1 }
   0x8   : > { %s1135_s30 = scalar_select %p155_p1, %s1053_s23, %s157_s28  }
   0x9   : > { %p1137_p5 = por %p168_p2, %p167_p0  ;;  %p1141_p6 = por %p174_p4, %p173_p3 }
   0xa   : > { %p823_p7 = scmp.ge.s32.totalorder %s1057_s24, 1  ;;  %p214_p8 = scmp.lt.s32.totalorder %s1057_s24, 3 }
   0xc   : > { %p215_p9 = pnand %p823_p7, %p214_p8 }
   0xd   : > { %v969_v0 = vld [vmem:[%s1303_s1 + $0x4] ss:$12 sps:$4 sm:$0xff] (!%p215_p9)   ;;  %p243_p10 = scmp.lt.s32.totalorder (!%p215_p9), %s1120_s25, 1  ;;  %v971_v1 = vld [vmem:[%s1303_s1] ss:$12 sps:$4 sm:$0xff] (!%p215_p9)   ;;  %v1059_v2 = vmov (!%p215_p9), 0  }
   0xe   : > { %218 = sbr.rel (%p215_p9) target bundleno = 1774 (0x6ee), region = 44  ;;  %326 = vmatprep.mubr.bf16.mxu1 (!%p215_p9), %v1059_v2  ;;  %294 = vmatprep.subr.bf16.mxu1 (!%p215_p9), %v969_v0  ;;  %v972_v3 = vld [vmem:[%s1303_s1 + $0x1c] ss:$12 sps:$4 sm:$0xff] (!%p215_p9)   ;;  %v1060_v4 = vmov (!%p215_p9), 0.0   ;;  %v974_v5 = vld [vmem:[%s1303_s1 + $0x18] ss:$12 sps:$4 sm:$0xff] (!%p215_p9)  }
   0xf   : > { %894 = vmatprep.subr.bf16.mxu0 (!%p215_p9), %v1060_v4  ;;  %295 = vmatpush1.bf16.msra.mxu1 (!%p215_p9), %v971_v1  ;;  %v975_v6 = vld [vmem:[%s1303_s1 + $0x8] ss:$12 sps:$4 sm:$0xff] (!%p215_p9)   ;;  %vm290_vm0 = vcmask (!%p215_p9), 261120   ;;  %v976_v9 = vld [vmem:[%s1303_s1 + $0x20] ss:$12 sps:$4 sm:$0xff] (!%p215_p9)   ;;  %vm1061_vm1 = vmmov (!%p215_p9), 0  }
  0x10   : > { %296 = vmatprep.subr.bf16.mxu1 (!%p215_p9), %v972_v3  ;;  %896 = vmatprep.mubr.msk.bf16.mxu0 (!%p215_p9), %vm1061_vm1, %v1060_v4  ;;  %vm379_vm2 = vcmask (!%p215_p9), 523264   ;;  %s1062_s11 = smov (!%p215_p9), 64   ;;  %vm442_vm3 = vcmask (!%p215_p9), 1043456   ;;  %v375_v26 = vld [vmem:[%s1305_s3] sm:$0xff] (!%p215_p9)  ;;  %vm426_vm4 = vcmask (!%p215_p9), 64512   ;;  %v978_v60 = vld [vmem:[%s1304_s2 + $0x8] sm:$0xff] (!%p215_p9)  }
  0x11   : > { %v977_v59 = vld [vmem:[%s1304_s2] sm:$0xff] (!%p215_p9)   ;;  %v979_v61 = vld [vmem:[%s1304_s2 + $0x10] sm:$0xff] (!%p215_p9)   ;;  %vm487_vm5 = vcmask (!%p215_p9), 519168   ;;  %v980_v63 = vld [vmem:[%s1304_s2 + $0x18] sm:$0xff] (!%p215_p9)   ;;  %vm609_vm6 = vcmask (!%p215_p9), 1043968  }
  0x13   : > { %297 = vmatpush1.bf16.msra.mxu1 (!%p215_p9), %v974_v5  ;;  %v981_v5 = vld [vmem:[%s1304_s2 + $0x20] sm:$0xff] (!%p215_p9)  }
  0x14   : > { %874 = vmatprep.subr.bf16.mxu1 (!%p215_p9), %v1060_v4 }
  0x15   : > { %s244_s15 = scalar_select %p243_p10, %s1120_s25, 1 }
  0x17   : > { %s825_s18 = sshll.u32 %s244_s15, 3 }
  0x18   : > { %s246_s26 = scalar_lea.vmem %s1302_s0, %s825_s18 }
  0x19   : > { %v1168_v7 = vld [vmem:[%s246_s26] sm:$0xff]  ;;  %s850_s26 = sshll.u32 %s1120_s25, 7  ;;  %s1063_s25 = smov [#allocation3]  }
  0x1a   : > { %v249_v8 = vpack.c.bf16 %v1168_v7, %v1168_v7  ;;  %s1259_s12 = scalar_lea.hbm %s1308_s6, %s850_s26  ;;  %s999_s15 = sshll.u32 %s1063_s25, 4  ;;  %s1000_s15 = int_to_ptr.vmem [resolvable:$false] %s999_s15 }
  0x1c   : > { %832 = vmatmul.mubr.msk.bf16.vlgmr.msra.gmra.mrb[0].mxu1 %vm290_vm0, %v249_v8 }
  0x1d   : > { %875 = vmatpush3.bf16.msra.mxu1 %v975_v6  ;;  %878 = vmatprep.mubr.msk.bf16.mxu1 %vm1061_vm1, %v1060_v4  ;;  %v982_v6 = vld [vmem:[%s1304_s2 + $0x28] sm:$0xff]  }
  0x1e   : > { %876 = vmatprep.subr.bf16.mxu1 %v1060_v4 }
  0x21   : > { %877 = vmatpush3.bf16.msra.mxu1 %v976_v9  ;;  %v984_v9 = vld [vmem:[%s1304_s2 + $0x38] sm:$0xff]  }
  0x22   : > { %882 = vmatprep.subr.bf16.mxu1 %v1060_v4 }
  0x24   : > { %879 = vmatmul.mubr.msk.bf16.vlgmr.msra.gmra.mrb[4].mxu1 %vm290_vm0, %v249_v8  ;;  %v983_v8 = vld [vmem:[%s1304_s2 + $0x30] sm:$0xff]  }
  0x25   : > { %884 = vmatprep.mubr.msk.bf16.mxu1 %vm1061_vm1, %v1060_v4 }
  0xef   : > { %v328_v10 = vpop.f32.mrb[0].mxu1 }
  0xf0   : > { %v330_v11 = vpop.f32.mrb[1].mxu1  ;;  %v376_v16 = vpack.c.bf16 %v328_v10, %v328_v10 }
  0xf1   : > { %v377_v12 = vpack.c.bf16 %v330_v11, %v330_v11  ;;  %v332_v13 = vpop.f32.mrb[2].mxu1 }
  0xf2   : > { %v333_v14 = vpop.f32.mrb[3].mxu1 }
  0xf3   : > { %v384_v15 = vsel %vm379_vm2, %v377_v12, 0  ;;  %493 = vrot.lane.b32.xlu0 %v377_v12, %s1062_s11 }
  0xf4   : > { %883 = vmatpush3.bf16.xpose.msra.mxu1 %v384_v15 }
  0xf5   : > { %888 = vmatprep.subr.bf16.mxu1 %v1060_v4 }
  0xf7   : > { %490 = vrot.lane.b32.xlu0 %v376_v16, %s1062_s11  ;;  %v369_v17 = vpop.f32.mrb[4].mxu1 }
  0xf8   : > { %v378_v18 = vpack.c.bf16 %v369_v17, %v369_v17  ;;  %v880_v19 = vpop.f32.mrb[5].mxu1 }
  0xf9   : > { %v372_v20 = vpop.f32.mrb[6].mxu1 }
  0xfa   : > { %v444_v21 = vsel %vm442_vm3, %v378_v18, 0  ;;  %v881_v22 = vpop.f32.mrb[7].mxu1 }
  0xfb   : > { %885 = vmatmul.mubr.msk.bf16.vlgmr.msra.gmra.mrb[8].mxu1 %vm379_vm2, %v376_v16 }
  0xfc   : > { %890 = vmatprep.mubr.msk.bf16.mxu1 %vm1061_vm1, %v1060_v4  ;;  %889 = vmatpush3.bf16.msra.mxu1 %v444_v21 }
  0xfd   : > { %900 = vmatprep.subr.bf16.mxu1 %v1060_v4 }
 0x165   : > { %v494_v23 = vpop.permute.xlu0 %493 }
 0x166   : > { %v499_v24 = vsel %vm379_vm2, %v494_v23, 0 }
 0x167   : > { %895 = vmatpush3.bf16.xpose.msra.mxu0 %v499_v24 }
 0x168   : > { %906 = vmatprep.subr.bf16.mxu0 %v1060_v4 }
 0x169   : > { %v491_v25 = vpop.permute.xlu0 %490 }
 0x16e   : > { %897 = vmatmul.mubr.msk.bf16.vlgmr.msra.gmra.mrb[0].mxu0 %vm379_vm2, %v491_v25 }
 0x16f   : > { %922 = vmatprep.mubr.msk.bf16.mxu0 %vm1061_vm1, %v1060_v4  ;;  %907 = vmatpush3.bf16.msra.mxu0 %v977_v59 }
 0x170   : > { %908 = vmatprep.subr.bf16.mxu0 %v1060_v4 }
 0x173   : > { %909 = vmatpush3.bf16.msra.mxu0 %v978_v60 }
 0x174   : > { %910 = vmatprep.subr.bf16.mxu0 %v1060_v4 }
 0x177   : > { %911 = vmatpush3.bf16.msra.mxu0 %v979_v61 }
 0x178   : > { %912 = vmatprep.subr.bf16.mxu0 %v1060_v4 }
 0x17b   : > { %913 = vmatpush3.bf16.msra.mxu0 %v980_v63 }
 0x17c   : > { %914 = vmatprep.subr.bf16.mxu0 %v1060_v4 }
 0x17f   : > { %915 = vmatpush3.bf16.msra.mxu0 %v981_v5 }
 0x180   : > { %916 = vmatprep.subr.bf16.mxu0 %v1060_v4 }
 0x183   : > { %917 = vmatpush3.bf16.msra.mxu0 %v982_v6 }
 0x184   : > { %918 = vmatprep.subr.bf16.mxu0 %v1060_v4 }
 0x187   : > { %919 = vmatpush3.bf16.msra.mxu0 %v983_v8 }
 0x188   : > { %920 = vmatprep.subr.bf16.mxu0 %v1060_v4 }
 0x18b   : > { %921 = vmatpush3.bf16.msra.mxu0 %v984_v9 }
 0x1ce   : > { %v420_v27 = vpop.f32.mrb[8].mxu1 }
 0x1cf   : > { %v421_v28 = vadd.f32 %v420_v27, %v375_v26  ;;  %v886_v29 = vpop.f32.mrb[9].mxu1 }
 0x1d0   : > { %v423_v30 = vpop.f32.mrb[10].mxu1 }
 0x1d1   : > { %v887_v31 = vpop.f32.mrb[11].mxu1  ;;  %v427_v32 = vsel %vm426_vm4, %v421_v28, -inf  ;;  %v847_v30 = vld [vmem:[%s1306_s4] ss:$0 sm:$0xff] }
 0x1d2   : > { %428 = vmax.xlane.f32.xlu1 %v427_v32  ;;  %v848_v32 = vld [vmem:[%s1307_s5] ss:$0 sm:$0xff] }
 0x241   : > { %v535_v33 = vpop.f32.mrb[0].mxu0 }
 0x242   : > { %v536_v34 = vadd.f32 %v535_v33, %v375_v26  ;;  %v898_v35 = vpop.f32.mrb[1].mxu0 }
 0x243   : > { %v538_v36 = vpop.f32.mrb[2].mxu0 }
 0x244   : > { %v899_v37 = vpop.f32.mrb[3].mxu0  ;;  %v541_v38 = vsel %vm426_vm4, %v536_v34, -inf }
 0x245   : > { %542 = vmax.xlane.f32.xlu1 %v541_v38 }
 0x25f   : > { %v429_v39 = vpop.xlane.xlu1 %428 }
 0x260   : > { %v430_v40 = vsub.f32 %v421_v28, %v429_v39 }
 0x262   : > { %v431_v41 = vmul.f32 1.442695, %v430_v40 }
 0x264   : > { %985 = vpow2.f32 %v431_v41 }
 0x26e   : > { %v986_v42 = vpop.eup %985 }
 0x26f   : > { %v433_v43 = vsel %vm426_vm4, %v986_v42, 0.0 }
 0x270   : > { %434 = vadd.xlane.f32.xlu0 %v433_v43 }
 0x2d2   : > { %v543_v44 = vpop.xlane.xlu1 %542 }
 0x2d3   : > { %v544_v45 = vsub.f32 %v536_v34, %v543_v44 }
 0x2d5   : > { %v545_v46 = vmul.f32 1.442695, %v544_v45 }
 0x2d7   : > { %987 = vpow2.f32 %v545_v46 }
 0x2e1   : > { %v988_v47 = vpop.eup %987 }
 0x2e2   : > { %v547_v48 = vsel %vm426_vm4, %v988_v47, 0.0 }
 0x2e3   : > { %548 = vadd.xlane.f32.xlu1 %v547_v48 }
 0x2f4   : > { %554 = vrot.lane.b32.xlu1 %v378_v18, %s1062_s11 }
 0x2fd   : > { %v435_v49 = vpop.xlane.xlu0 %434 }
 0x2fe   : > { %989 = vrcp.f32 %v435_v49 }
 0x308   : > { %v990_v50 = vpop.eup %989 }
 0x309   : > { %v437_v51 = vmul.f32 %v990_v50, %v986_v42 }
 0x30b   : > { %v438_v52 = vpack.c.bf16 %v437_v51, %v437_v51 }
 0x30d   : > { %891 = vmatmul.mubr.msk.bf16.vlgmr.msra.gmra.mrb[12].mxu1 %vm426_vm4, %v438_v52 }
 0x30e   : > { %902 = vmatprep.mubr.msk.bf16.mxu1 %vm1061_vm1, %v1060_v4 }
 0x370   : > { %v549_v53 = vpop.xlane.xlu1 %548 }
 0x371   : > { %991 = vrcp.f32 %v549_v53 }
 0x374   : > { %v555_v54 = vpop.permute.xlu1 %554 }
 0x375   : > { %v560_v55 = vsel %vm442_vm3, %v555_v54, 0 }
 0x376   : > { %901 = vmatpush3.bf16.msra.mxu1 %v560_v55 }
 0x37b   : > { %v992_v56 = vpop.eup %991 }
 0x37c   : > { %v551_v57 = vmul.f32 %v992_v56, %v988_v47 }
 0x37e   : > { %v552_v58 = vpack.c.bf16 %v551_v57, %v551_v57 }
 0x380   : > { %903 = vmatmul.mubr.msk.bf16.vlgmr.msra.gmra.mrb[16].mxu1 %vm426_vm4, %v552_v58 }
 0x3e0   : > { %v480_v62 = vpop.f32.mrb[12].mxu1 }
 0x3e1   : > { %v486_v0 = vpack.c.bf16 %v480_v62, %v480_v62  ;;  %v892_v1 = vpop.f32.mrb[13].mxu1 }
 0x3e2   : > { %v483_v2 = vpop.f32.mrb[14].mxu1 }
 0x3e3   : > { %488 = vst.msk [vmem:[#allocation2] sm:$0xf] %vm487_vm5, %v486_v0  ;;  %v893_v3 = vpop.f32.mrb[15].mxu1 }
 0x453   : > { %v596_v10 = vpop.f32.mrb[16].mxu1 }
 0x454   : > { %v853_v11 = vpack.c.bf16 %v596_v10, %v596_v10  ;;  %v904_v12 = vpop.f32.mrb[17].mxu1 }
 0x455   : > { %v599_v13 = vpop.f32.mrb[18].mxu1 }
 0x456   : > { %606 = vrot.lane.b32.xlu1 %v853_v11, %s1062_s11  ;;  %v905_v14 = vpop.f32.mrb[19].mxu1  ;;  %s240_s11 = sand.u32 1, %s1049_s22  }
 0x457   : > { %s824_s16 = sshll.u32 %s240_s11, 3  ;;  %s748_s13 = scalar_lea.sflag [#allocation4], %s240_s11 }
 0x458   : > { %s242_s28 = scalar_lea.vmem [#allocation3], %s824_s16  ;;  %s1001_s16 = scalar_lea.vmem %s1000_s15, 256 }
 0x459   : > { %s761_s29 = sshll.u32 %s242_s28, 4  ;;  %s1261_s29 = int_to_ptr.vmem [resolvable:$true] %s761_s29 }
 0x45a   : > { %s995_s14 = scalar_lea.vmem %s1261_s29, 128  ;;  %p1002_p0 = scmp.lt.s32.totalorder %s1261_s29, %s1000_s15 }
 0x45b   : > { %p996_p11 = scmp.ne.s32.totalorder %s1261_s29, %s995_s14  ;;  %p1003_p1 = scmp.lt.s32.totalorder %s1001_s16, %s995_s14 }
 0x45d   : > { %p997_p12 = pnand %p996_p11, %p1137_p5  ;;  %p1004_p2 = por %p1003_p1, %p1002_p0 }
 0x45f   : > { %p998_p13 = pneg %p997_p12 }
 0x461   : > { %p1005_p3 = pnand %p1004_p2, %p998_p13 }
 0x4c8   : > { %v607_v15 = vpop.permute.xlu1 %606 }
 0x4c9   : > { %610 = vst.msk [vmem:[#allocation2] sm:$0xf] %vm609_vm6, %v607_v15 }
 0x4d0   : > { %v611_v16 = vld [vmem:[#allocation2] sm:$0xf] }
 0x4d1   : > { %923 = vmatmul.mubr.bf16.vlgmr.msra.gmra.mrb[4].mxu0 %v611_v16 }
 0x5a4   : > { %v710_v17 = vpop.f32.mrb[4].mxu0 }
 0x5a5   : > { %v711_v18 = vadd.f32 %v710_v17, %v1168_v7  ;;  %v924_v19 = vpop.f32.mrb[5].mxu0 }
 0x5a6   : > { %v713_v20 = vpop.f32.mrb[6].mxu0 }
 0x5a7   : > { %v925_v4 = vpop.f32.mrb[7].mxu0  ;;  %v716_v21 = vsel %vm290_vm0, %v711_v18, 0.0 }
 0x5a8   : > { %717 = vadd.xlane.f32.xlu1 %v716_v21 }
 0x635   : > { %v718_v22 = vpop.xlane.xlu1 %717 }
 0x636   : > { %v720_v23 = vmul.f32 0.03125, %v718_v22 }
 0x638   : > { %v721_v24 = vsub.f32 %v711_v18, %v720_v23 }
 0x63a   : > { %v722_v25 = vmul.f32 %v721_v24, %v721_v24 }
 0x63c   : > { %v723_v26 = vsel %vm290_vm0, %v722_v25, 0.0 }
 0x63d   : > { %724 = vadd.xlane.f32.xlu0 %v723_v26 }
 0x6ca   : > { %v725_v27 = vpop.xlane.xlu0 %724 }
 0x6cb   : > { %v726_v28 = vmul.f32 0.03125, %v725_v27 }
 0x6cd   : > { %v727_v29 = vadd.f32 1e-05, %v726_v28 }
 0x6cf   : > { %993 = vrsqrt.f32 %v727_v29 }
 0x6d9   : > { %v994_v7 = vpop.eup %993 }
 0x6da   : > { %v729_v31 = vmul.f32 %v994_v7, %v721_v24 }
 0x6dc   : > { %v737_v33 = vmul.f32 %v847_v30, %v729_v31 }
 0x6de   : > { %v745_v34 = vadd.f32 %v848_v32, %v737_v33 }
 0x6e0   : > { %746 = vst.msk [vmem:[%s242_s28] sm:$0xff] %vm290_vm0, %v745_v34 }
 0x6e1   : > { %1008 = shalt.err (!%p1005_p3)
}
 0x6e2   : > { %s1009_s11 = scalar_lea.hbm %s1259_s12, 128  ;;  %s1013_s19 = scalar_lea.hbm %s1308_s6, 256 }
 0x6e3   : > { %p1010_p4 = scmp.ne.s32.totalorder %s1259_s12, %s1009_s11  ;;  %p1014_p9 = scmp.lt.u32.totalorder %s1259_s12, %s1308_s6 }
 0x6e4   : > { %p1015_p10 = scmp.lt.u32.totalorder %s1013_s19, %s1009_s11  ;;  %p1017_p12 = scmp.lt.u32.totalorder %s1009_s11, %s1259_s12 }
 0x6e5   : > { %p1011_p7 = pnand %p1010_p4, %p1137_p5 }
 0x6e6   : > { %p1016_p11 = por %p1015_p10, %p1014_p9 }
 0x6e7   : > { %p1012_p8 = pneg %p1011_p7 }
 0x6e8   : > { %p1018_p13 = por %p1017_p12, %p1016_p11 }
 0x6ea   : > { %p1019_p0 = pnand %p1018_p13, %p1012_p8 }
 0x6ec   : > { %1022 = shalt.err (!%p1019_p0)
}
 0x6ed   : > { %926 = dma.vmem_to_hbm [thread:$0]  (%p1137_p5), %s1261_s29, 128, %s1259_s12, %s748_s13  }
 0x6ee PF: > { %p932_p1 = scmp.ge.s32.totalorder %s1057_s24, 2  ;;  %s773_s28 = sand.u32 1, %s1045_s21  }
 0x6ef   : > { %s774_s9 = scalar_lea.sflag [#allocation4], %s773_s28 }
 0x6f0   : > { %p929_p2 = pnand %p932_p1, %p1141_p6 }
 0x6f2   : > { %1040 = dma.done.wait (!%p929_p2), %s774_s9, 128  }
 0x6f3   : > { %1042 = vsyncadd (!%p929_p2), %s774_s9, 4294967168  ;;  %p16_p3 = scmp.ge.s32.totalorder %s1124_s27, 4   ;;  %s1311_s21 = smov %s1049_s22 }
 0x6f4   : > { %s1312_s22 = smov %s1053_s23  ;;  %s1313_s23 = smov %s1135_s30 }
 0x6f5   : > { %s1314_s24 = smov %s1124_s27  ;;  %18 = sbr.rel (!%p16_p3) target bundleno = 3 (0x3), region = 79 }
 0x6fc   :  { %779 = vsyncpa [#allocation4], 1 }
 0x6fd   :  { %781 = vsyncpa [#allocation4 + $0x1], 1 }

</bundles_post_ra>
